<compile_context>
chip_gen: v7x
topology: tpu7x:2x2x1
jax: 0.10.0
libtpu: 0.0.40
codegen_flags: <defaults>
</compile_context>

<pallas_src>
import jax
import jax.numpy as jnp
from jax.experimental import pallas as pl
from jax.experimental.pallas import tpu as pltpu


LANE = 128          # lane width: pad all feature dims to a multiple of this
SUBLANE = 8         # minimum batch-tile granularity
MAX_BATCH_TILE = 128


def _round_up(n, m):
    return ((n + m - 1) // m) * m


def dqn_forward_kernel(x_ref, w1_ref, b1_ref, w2_ref, b2_ref, w3_ref, b3_ref,
                       o_ref):
    """One batch tile of the full DQN MLP forward."""
    neg_slope = jnp.float32(0.01)  # F.leaky_relu default negative_slope

    x = x_ref[...]                 # (TB, S_pad) bf16

    # fc1 (bf16 MXU, f32 acc) + bias + leaky_relu in f32
    h1 = jnp.dot(x, w1_ref[...], preferred_element_type=jnp.float32)
    h1 = h1 + b1_ref[...]
    h1 = jnp.where(h1 > 0, h1, neg_slope * h1)

    # fc2 + bias + leaky_relu
    h2 = jnp.dot(h1.astype(w2_ref.dtype), w2_ref[...],
                 preferred_element_type=jnp.float32)
    h2 = h2 + b2_ref[...]
    h2 = jnp.where(h2 > 0, h2, neg_slope * h2)

    # fc3 (no activation)
    out = jnp.dot(h2.astype(w3_ref.dtype), w3_ref[...],
                  preferred_element_type=jnp.float32)
    out = out + b3_ref[...]
    o_ref[...] = out.astype(o_ref.dtype)


def pad_params(params):
    """Zero-pad feature dims to multiples of 128; weights -> bf16, biases f32.

    Input params (unpadded, f32):
      w1 (S, H), b1 (1, H), w2 (H, 2H), b2 (1, 2H), w3 (2H, A), b3 (1, A)
    """
    def pad2(a, r, c, dtype):
        out = jnp.zeros((r, c), dtype)
        return out.at[:a.shape[0], :a.shape[1]].set(a.astype(dtype))

    s, h1 = params["w1"].shape
    h2 = params["w2"].shape[1]
    a = params["w3"].shape[1]
    s_p, h1_p, h2_p, a_p = (_round_up(d, LANE) for d in (s, h1, h2, a))

    return {
        "w1": pad2(params["w1"], s_p, h1_p, jnp.bfloat16),
        "b1": pad2(params["b1"], 1, h1_p, jnp.float32),
        "w2": pad2(params["w2"], h1_p, h2_p, jnp.bfloat16),
        "b2": pad2(params["b2"], 1, h2_p, jnp.float32),
        "w3": pad2(params["w3"], h2_p, a_p, jnp.bfloat16),
        "b3": pad2(params["b3"], 1, a_p, jnp.float32),
    }


def dqn_forward(x, padded_params, action_dim):
    """Run the DQN forward pass as a single Pallas TPU kernel.

    x: (batch, state_dim) float32 (unpadded)
    padded_params: output of pad_params()
    action_dim: true (unpadded) number of actions
    Returns: (batch, action_dim) float32
    """
    batch, state_dim = x.shape
    s_p = padded_params["w1"].shape[0]
    h1_p = padded_params["w1"].shape[1]
    h2_p = padded_params["w2"].shape[1]
    a_p = padded_params["w3"].shape[1]

    # Batch tiling: >=8 rows per tile, cap at 128; pad batch to a tile multiple.
    tb = min(MAX_BATCH_TILE, _round_up(batch, SUBLANE))
    batch_p = _round_up(batch, tb)

    # Pad + cast x once in the wrapper (bf16 halves the x DMA bytes).
    x_p = jnp.zeros((batch_p, s_p), jnp.bfloat16)
    x_p = x_p.at[:batch, :state_dim].set(x.astype(jnp.bfloat16))

    resident = lambda i: (0, 0)     # weights/biases: DMA once, stay in VMEM
    grid = (batch_p // tb,)

    out_p = pl.pallas_call(
        dqn_forward_kernel,
        out_shape=jax.ShapeDtypeStruct((batch_p, a_p), jnp.float32),
        grid_spec=pltpu.PrefetchScalarGridSpec(
            num_scalar_prefetch=0,
            grid=grid,
            in_specs=[
                pl.BlockSpec((tb, s_p), lambda i: (i, 0)),    # x: batch-tiled
                pl.BlockSpec((s_p, h1_p), resident),          # w1
                pl.BlockSpec((1, h1_p), resident),            # b1
                pl.BlockSpec((h1_p, h2_p), resident),         # w2
                pl.BlockSpec((1, h2_p), resident),            # b2
                pl.BlockSpec((h2_p, a_p), resident),          # w3
                pl.BlockSpec((1, a_p), resident),             # b3
            ],
            out_specs=pl.BlockSpec((tb, a_p), lambda i: (i, 0)),
        ),
        compiler_params=pltpu.CompilerParams(
            dimension_semantics=("parallel",),   # megacore on v7x
        ),
    )(x_p, padded_params["w1"], padded_params["b1"],
      padded_params["w2"], padded_params["b2"],
      padded_params["w3"], padded_params["b3"])

    return out_p[:batch, :action_dim]


def init_dqn_params(key, state_dim, action_dim, hidden_dim):
    """Deterministic parameter init (PyTorch-Linear-style uniform bounds)."""
    ks = jax.random.split(key, 6)

    def uniform(k, shape, fan_in):
        bound = 1.0 / jnp.sqrt(jnp.float32(fan_in))
        return jax.random.uniform(k, shape, jnp.float32, -bound, bound)

    return {
        "w1": uniform(ks[0], (state_dim, hidden_dim), state_dim),
        "b1": uniform(ks[1], (1, hidden_dim), state_dim),
        "w2": uniform(ks[2], (hidden_dim, hidden_dim * 2), hidden_dim),
        "b2": uniform(ks[3], (1, hidden_dim * 2), hidden_dim),
        "w3": uniform(ks[4], (hidden_dim * 2, action_dim), hidden_dim * 2),
        "b3": uniform(ks[5], (1, action_dim), hidden_dim * 2),
    }


def dqn_forward_ref(x, params):
    """Pure-JAX reference that mirrors the kernel's bf16/f32 mixed precision."""
    def lrelu(v):
        return jnp.where(v > 0, v, 0.01 * v)

    w1 = params["w1"].astype(jnp.bfloat16)
    w2 = params["w2"].astype(jnp.bfloat16)
    w3 = params["w3"].astype(jnp.bfloat16)

    h1 = lrelu(jnp.dot(x.astype(jnp.bfloat16), w1,
                       preferred_element_type=jnp.float32) + params["b1"])
    h2 = lrelu(jnp.dot(h1.astype(jnp.bfloat16), w2,
                       preferred_element_type=jnp.float32) + params["b2"])
    return jnp.dot(h2.astype(jnp.bfloat16), w3,
                   preferred_element_type=jnp.float32) + params["b3"]


def dqn_forward_ref_f32(x, params):
    """Full-precision reference for a loose sanity check."""
    def lrelu(v):
        return jnp.where(v > 0, v, 0.01 * v)
    h1 = lrelu(x @ params["w1"] + params["b1"])
    h2 = lrelu(h1 @ params["w2"] + params["b2"])
    return h2 @ params["w3"] + params["b3"]


if __name__ == "__main__":
    key = jax.random.PRNGKey(0)
    k_param, k_x = jax.random.split(key)

    batch = 8
    state_dim = 16
    hidden_dim = 64        # module default -> fc2 width 128
    action_dim = 6         # Pong action space

    params = init_dqn_params(k_param, state_dim, action_dim, hidden_dim)
    padded = pad_params(params)
    x = jax.random.normal(k_x, (batch, state_dim), jnp.float32)

    out = dqn_forward(x, padded, action_dim)
    out = jax.block_until_ready(out)

    assert out.shape == (batch, action_dim)

    ref_mixed = dqn_forward_ref(x, params)
    assert jnp.allclose(out, ref_mixed, atol=2e-3, rtol=2e-3), \
        "mismatch vs mixed-precision reference"

    ref_f32 = dqn_forward_ref_f32(x, params)
    assert jnp.allclose(out, ref_f32, atol=5e-2, rtol=5e-2), \
        "mismatch vs f32 reference"

    print("KERNEL_OK")
</pallas_src>

<mosaic_0001>
module attributes {stable_mosaic.version = 11 : i64} {
  func.func @dqn_forward_kernel(%arg0: i32, %arg1: memref<8x128xbf16, #tpu.memory_space<vmem>>, %arg2: memref<128x128xbf16, #tpu.memory_space<vmem>>, %arg3: memref<1x128xf32, #tpu.memory_space<vmem>>, %arg4: memref<128x128xbf16, #tpu.memory_space<vmem>>, %arg5: memref<1x128xf32, #tpu.memory_space<vmem>>, %arg6: memref<128x128xbf16, #tpu.memory_space<vmem>>, %arg7: memref<1x128xf32, #tpu.memory_space<vmem>>, %arg8: memref<8x128xf32, #tpu.memory_space<vmem>>) attributes {dimension_semantics = [#tpu.dimension_semantics<parallel>], iteration_bounds = array<i64: 1>, scalar_prefetch = 0 : i64, scratch_operands = 0 : i64, tpu.core_type = #tpu.core_type<tc>, window_params = [{transform_indices = @transform_0, window_bounds = array<i64: 8, 128>}, {pipeline_mode = #tpu.pipeline_mode<synchronous>, transform_indices = @transform_1, window_bounds = array<i64: 128, 128>}, {pipeline_mode = #tpu.pipeline_mode<synchronous>, transform_indices = @transform_2, window_bounds = array<i64: 1, 128>}, {pipeline_mode = #tpu.pipeline_mode<synchronous>, transform_indices = @transform_3, window_bounds = array<i64: 128, 128>}, {pipeline_mode = #tpu.pipeline_mode<synchronous>, transform_indices = @transform_4, window_bounds = array<i64: 1, 128>}, {pipeline_mode = #tpu.pipeline_mode<synchronous>, transform_indices = @transform_5, window_bounds = array<i64: 128, 128>}, {pipeline_mode = #tpu.pipeline_mode<synchronous>, transform_indices = @transform_6, window_bounds = array<i64: 1, 128>}, {transform_indices = @transform_7, window_bounds = array<i64: 8, 128>}]} {
    %c0 = arith.constant 0 : index
    %c0_0 = arith.constant 0 : index
    %0 = vector.load %arg1[%c0, %c0_0] : memref<8x128xbf16, #tpu.memory_space<vmem>>, vector<8x128xbf16>
    %c0_1 = arith.constant 0 : index
    %c0_2 = arith.constant 0 : index
    %1 = vector.load %arg2[%c0_1, %c0_2] : memref<128x128xbf16, #tpu.memory_space<vmem>>, vector<128x128xbf16>
    %cst = arith.constant dense<0.000000e+00> : vector<8x128xf32>
    %2 = tpu.matmul %0, %1, %cst {dimension_numbers = #tpu.dot_dimension_numbers<[1], [0], [0], [1], [0, 0, 1, 1], [], []>} : vector<8x128xbf16>, vector<128x128xbf16>, vector<8x128xf32> -> vector<8x128xf32>
    %c0_3 = arith.constant 0 : index
    %c0_4 = arith.constant 0 : index
    %3 = vector.load %arg3[%c0_3, %c0_4] : memref<1x128xf32, #tpu.memory_space<vmem>>, vector<1x128xf32>
    %4 = vector.broadcast %3 : vector<1x128xf32> to vector<8x128xf32>
    %5 = arith.addf %2, %4 : vector<8x128xf32>
    %cst_5 = arith.constant 0.000000e+00 : f32
    %6 = vector.broadcast %cst_5 : f32 to vector<8x128xf32>
    %7 = arith.cmpf ogt, %5, %6 : vector<8x128xf32>
    %cst_6 = arith.constant 0.00999999977 : f32
    %8 = vector.broadcast %cst_6 : f32 to vector<8x128xf32>
    %9 = arith.mulf %8, %5 : vector<8x128xf32>
    %10 = arith.select %7, %5, %9 : vector<8x128xi1>, vector<8x128xf32>
    %11 = arith.truncf %10 : vector<8x128xf32> to vector<8x128xbf16>
    %c0_7 = arith.constant 0 : index
    %c0_8 = arith.constant 0 : index
    %12 = vector.load %arg4[%c0_7, %c0_8] : memref<128x128xbf16, #tpu.memory_space<vmem>>, vector<128x128xbf16>
    %cst_9 = arith.constant dense<0.000000e+00> : vector<8x128xf32>
    %13 = tpu.matmul %11, %12, %cst_9 {dimension_numbers = #tpu.dot_dimension_numbers<[1], [0], [0], [1], [0, 0, 1, 1], [], []>} : vector<8x128xbf16>, vector<128x128xbf16>, vector<8x128xf32> -> vector<8x128xf32>
    %c0_10 = arith.constant 0 : index
    %c0_11 = arith.constant 0 : index
    %14 = vector.load %arg5[%c0_10, %c0_11] : memref<1x128xf32, #tpu.memory_space<vmem>>, vector<1x128xf32>
    %15 = vector.broadcast %14 : vector<1x128xf32> to vector<8x128xf32>
    %16 = arith.addf %13, %15 : vector<8x128xf32>
    %cst_12 = arith.constant 0.000000e+00 : f32
    %17 = vector.broadcast %cst_12 : f32 to vector<8x128xf32>
    %18 = arith.cmpf ogt, %16, %17 : vector<8x128xf32>
    %cst_13 = arith.constant 0.00999999977 : f32
    %19 = vector.broadcast %cst_13 : f32 to vector<8x128xf32>
    %20 = arith.mulf %19, %16 : vector<8x128xf32>
    %21 = arith.select %18, %16, %20 : vector<8x128xi1>, vector<8x128xf32>
    %22 = arith.truncf %21 : vector<8x128xf32> to vector<8x128xbf16>
    %c0_14 = arith.constant 0 : index
    %c0_15 = arith.constant 0 : index
    %23 = vector.load %arg6[%c0_14, %c0_15] : memref<128x128xbf16, #tpu.memory_space<vmem>>, vector<128x128xbf16>
    %cst_16 = arith.constant dense<0.000000e+00> : vector<8x128xf32>
    %24 = tpu.matmul %22, %23, %cst_16 {dimension_numbers = #tpu.dot_dimension_numbers<[1], [0], [0], [1], [0, 0, 1, 1], [], []>} : vector<8x128xbf16>, vector<128x128xbf16>, vector<8x128xf32> -> vector<8x128xf32>
    %c0_17 = arith.constant 0 : index
    %c0_18 = arith.constant 0 : index
    %25 = vector.load %arg7[%c0_17, %c0_18] : memref<1x128xf32, #tpu.memory_space<vmem>>, vector<1x128xf32>
    %26 = vector.broadcast %25 : vector<1x128xf32> to vector<8x128xf32>
    %27 = arith.addf %24, %26 : vector<8x128xf32>
    %c0_19 = arith.constant 0 : index
    %c0_20 = arith.constant 0 : index
    %28 = vector.load %arg8[%c0_19, %c0_20] : memref<8x128xf32, #tpu.memory_space<vmem>>, vector<8x128xf32>
    tpu.vector_store %arg8[%c0_19, %c0_20], %27 {strides = array<i32>} : memref<8x128xf32, #tpu.memory_space<vmem>>, vector<8x128xf32>,
    return
  }
  func.func @transform_0(%arg0: i32) -> (i32, i32) {
    %c0_i32 = arith.constant 0 : i32
    %c0_i32_0 = arith.constant 0 : i32
    return %arg0, %c0_i32 : i32, i32
  }
  func.func @transform_1(%arg0: i32) -> (i32, i32) {
    %c0_i32 = arith.constant 0 : i32
    %c0_i32_0 = arith.constant 0 : i32
    %c0_i32_1 = arith.constant 0 : i32
    return %c0_i32, %c0_i32_0 : i32, i32
  }
  func.func @transform_2(%arg0: i32) -> (i32, i32) {
    %c0_i32 = arith.constant 0 : i32
    %c0_i32_0 = arith.constant 0 : i32
    %c0_i32_1 = arith.constant 0 : i32
    return %c0_i32, %c0_i32_0 : i32, i32
  }
  func.func @transform_3(%arg0: i32) -> (i32, i32) {
    %c0_i32 = arith.constant 0 : i32
    %c0_i32_0 = arith.constant 0 : i32
    %c0_i32_1 = arith.constant 0 : i32
    return %c0_i32, %c0_i32_0 : i32, i32
  }
  func.func @transform_4(%arg0: i32) -> (i32, i32) {
    %c0_i32 = arith.constant 0 : i32
    %c0_i32_0 = arith.constant 0 : i32
    %c0_i32_1 = arith.constant 0 : i32
    return %c0_i32, %c0_i32_0 : i32, i32
  }
  func.func @transform_5(%arg0: i32) -> (i32, i32) {
    %c0_i32 = arith.constant 0 : i32
    %c0_i32_0 = arith.constant 0 : i32
    %c0_i32_1 = arith.constant 0 : i32
    return %c0_i32, %c0_i32_0 : i32, i32
  }
  func.func @transform_6(%arg0: i32) -> (i32, i32) {
    %c0_i32 = arith.constant 0 : i32
    %c0_i32_0 = arith.constant 0 : i32
    %c0_i32_1 = arith.constant 0 : i32
    return %c0_i32, %c0_i32_0 : i32, i32
  }
  func.func @transform_7(%arg0: i32) -> (i32, i32) {
    %c0_i32 = arith.constant 0 : i32
    %c0_i32_0 = arith.constant 0 : i32
    return %arg0, %c0_i32 : i32, i32
  }
}

</mosaic_0001>

<bundles_post_ra>
// kernel: tpu_custom_call.1
= control target key start
LH: loop header
LB: loop body
LE: loop exit
PB: predicated region body
PF: predicated region fallthrough
CT: control target
= control target key end

     0   :  { %12 = vsyncpa [#allocation3], 0  ;;  %s863_s0 = inlined_call_operand.hbm [shape: bf16[8,128], index: 0, kind: input, shape index: {}]   ;;  %s864_s1 = inlined_call_operand.hbm [shape: bf16[128,128], index: 1, kind: input, shape index: {}]   ;;  %s865_s2 = inlined_call_operand.vmem [shape: f32[1,128], index: 2, kind: input, shape index: {}]   ;;  %s866_s3 = inlined_call_operand.hbm [shape: bf16[128,128], index: 3, kind: input, shape index: {}]   ;;  %s867_s4 = inlined_call_operand.vmem [shape: f32[1,128], index: 4, kind: input, shape index: {}]   ;;  %s868_s5 = inlined_call_operand.hbm [shape: bf16[128,128], index: 5, kind: input, shape index: {}]   ;;  %s869_s6 = inlined_call_operand.vmem [shape: f32[1,128], index: 6, kind: input, shape index: {}]   ;;  %s870_s7 = inlined_call_operand.hbm [shape: f32[8,128], index: 7, kind: output, shape index: {}]  }
   0x1   :  { %13 = vsyncpa [#allocation6], 0 }
   0x2   :  { %14 = vsyncpa [#allocation9], 0 }
   0x3   :  { %15 = vsyncpa [#allocation4], 0  ;;  %s706_s24 = smov [#allocation5]   ;;  %s588_s28 = scalar_lea.hbm %s864_s1, 1024 }
   0x4   :  { %s31_s25 = sshll.u32 %s706_s24, 4  ;;  %p589_p0 = scmp.ne.s32.totalorder %s864_s1, %s588_s28  ;;  %s32_s25 = int_to_ptr.vmem [resolvable:$true] %s31_s25 }
   0x5   :  { %p592_p1 = scmp.lt.u32.totalorder %s588_s28, %s864_s1 }
   0x7   :  { %p594_p2 = pnand %p592_p1, %p589_p0 }
   0x9   :  { %597 = shalt.err (!%p594_p2)
}
   0xa   :  { %s598_s10 = scalar_lea.vmem %s32_s25, 1024  ;;  %p603_p4 = scmp.lt.s32.totalorder %s32_s25, %s32_s25 }
   0xb   :  { %p599_p3 = scmp.ne.s32.totalorder %s32_s25, %s598_s10  ;;  %p604_p5 = scmp.lt.s32.totalorder %s598_s10, %s598_s10 }
   0xd   :  { %p605_p6 = por %p604_p5, %p603_p4 }
   0xf   :  { %p606_p7 = pnand %p605_p6, %p599_p3 }
  0x11   :  { %609 = shalt.err (!%p606_p7)
}
  0x12   :  { %s707_s11 = smov 64   ;;  %s708_s12 = smov 4  }
  0x13   :  { %37 = dma.hbm_to_vmem [thread:$0]  %s864_s1, 1024, %s32_s25, [#allocation6], %s707_s11, %s707_s11, %s708_s12  }
  0x14   :  { %s709_s15 = smov [#allocation2]   ;;  %s710_s17 = smov [#allocation7]  }
  0x15   :  { %s22_s16 = sshll.u32 %s709_s15, 4  ;;  %s45_s18 = sshll.u32 %s710_s17, 4  ;;  %s23_s16 = int_to_ptr.vmem [resolvable:$true] %s22_s16  ;;  %s46_s18 = int_to_ptr.vmem [resolvable:$true] %s45_s18 }
  0x16   :  { %s610_s21 = scalar_lea.hbm %s863_s0, 64 }
  0x17   :  { %p611_p8 = scmp.ne.s32.totalorder %s863_s0, %s610_s21  ;;  %p614_p9 = scmp.lt.u32.totalorder %s610_s21, %s863_s0 }
  0x19   :  { %p616_p10 = pnand %p614_p9, %p611_p8 }
  0x1b   :  { %619 = shalt.err (!%p616_p10)
}
  0x1c   :  { %s620_s1 = scalar_lea.vmem %s23_s16, 64  ;;  %p625_p12 = scmp.lt.s32.totalorder %s23_s16, %s23_s16 }
  0x1d   :  { %p621_p11 = scmp.ne.s32.totalorder %s23_s16, %s620_s1  ;;  %p626_p13 = scmp.lt.s32.totalorder %s620_s1, %s620_s1 }
  0x1f   :  { %p627_p0 = por %p626_p13, %p625_p12 }
  0x21   :  { %p628_p1 = pnand %p627_p0, %p621_p11 }
  0x23   :  { %631 = shalt.err (!%p628_p1)
}
  0x24   :  { %25 = dma.hbm_to_vmem [thread:$0]  %s863_s0, 64, %s23_s16, [#allocation3]  }
  0x25   :  { %s632_s30 = scalar_lea.hbm %s866_s3, 1024 }
  0x26   :  { %p633_p2 = scmp.ne.s32.totalorder %s866_s3, %s632_s30  ;;  %p636_p3 = scmp.lt.u32.totalorder %s632_s30, %s866_s3 }
  0x28   :  { %p638_p4 = pnand %p636_p3, %p633_p2 }
  0x2a   :  { %641 = shalt.err (!%p638_p4)
}
  0x2b   :  { %s642_s14 = scalar_lea.vmem %s46_s18, 1024  ;;  %p647_p6 = scmp.lt.s32.totalorder %s46_s18, %s46_s18 }
  0x2c   :  { %p643_p5 = scmp.ne.s32.totalorder %s46_s18, %s642_s14  ;;  %p648_p7 = scmp.lt.s32.totalorder %s642_s14, %s642_s14 }
  0x2e   :  { %p649_p8 = por %p648_p7, %p647_p6 }
  0x30   :  { %p650_p9 = pnand %p649_p8, %p643_p5 }
  0x32   :  { %653 = shalt.err (!%p650_p9)
}
  0x33   :  { %51 = dma.hbm_to_vmem [thread:$0]  %s866_s3, 1024, %s46_s18, [#allocation6], %s707_s11, %s707_s11, %s708_s12  }
  0x34   :  { %s711_s16 = smov [#allocation8]   ;;  %s654_s21 = scalar_lea.hbm %s868_s5, 1024 }
  0x35   :  { %s59_s17 = sshll.u32 %s711_s16, 4  ;;  %p655_p10 = scmp.ne.s32.totalorder %s868_s5, %s654_s21  ;;  %s60_s17 = int_to_ptr.vmem [resolvable:$true] %s59_s17 }
  0x36   :  { %p658_p11 = scmp.lt.u32.totalorder %s654_s21, %s868_s5 }
  0x38   :  { %p660_p12 = pnand %p658_p11, %p655_p10 }
  0x3a   :  { %663 = shalt.err (!%p660_p12)
}
  0x3b   :  { %s664_s1 = scalar_lea.vmem %s60_s17, 1024  ;;  %p669_p0 = scmp.lt.s32.totalorder %s60_s17, %s60_s17 }
  0x3c   :  { %p665_p13 = scmp.ne.s32.totalorder %s60_s17, %s664_s1  ;;  %p670_p1 = scmp.lt.s32.totalorder %s664_s1, %s664_s1 }
  0x3e   :  { %p671_p2 = por %p670_p1, %p669_p0 }
  0x40   :  { %p672_p3 = pnand %p671_p2, %p665_p13 }
  0x42   :  { %675 = shalt.err (!%p672_p3)
}
  0x43   :  { %65 = dma.hbm_to_vmem [thread:$0]  %s868_s5, 1024, %s60_s17, [#allocation9], %s707_s11, %s707_s11, %s708_s12  }
  0x44   :  { %698 = dma.done.wait [#allocation3], 64  }
  0x45   :  { %699 = vsyncadd [#allocation3], 4294967232 }
  0x46   :  { %700 = dma.done.wait [#allocation6], 2048  }
  0x47   :  { %701 = vsyncadd [#allocation6], 4294965248 }
  0x48   :  { %702 = dma.done.wait [#allocation9], 1024  }
  0x49   :  { %703 = vsyncadd [#allocation9], 4294966272  ;;  %v712_v0 = vmov 0.0   ;;  %vm713_vm0 = vmmov 0   ;;  %v564_v1 = vld [vmem:[#allocation5] sm:$0xff]   ;;  %v565_v2 = vld [vmem:[#allocation5 + $0x8] sm:$0xff]  }
  0x4a   :  { %495 = vmatprep.subr.bf16.mxu0 %v712_v0  ;;  %511 = vmatprep.mubr.msk.bf16.mxu0 %vm713_vm0, %v712_v0  ;;  %v566_v3 = vld [vmem:[#allocation5 + $0x10] sm:$0xff]   ;;  %v572_v4 = vld [vmem:[#allocation7] sm:$0xff]   ;;  %v567_v5 = vld [vmem:[#allocation5 + $0x18] sm:$0xff]   ;;  %s714_s28 = smov [#allocation10]  }
  0x4b   :  { %515 = vmatprep.subr.bf16.mxu1 %v712_v0  ;;  %531 = vmatprep.mubr.msk.bf16.mxu1 %vm713_vm0, %v712_v0  ;;  %v573_v6 = vld [vmem:[#allocation7 + $0x8] sm:$0xff]   ;;  %v568_v7 = vld [vmem:[#allocation5 + $0x20] sm:$0xff]   ;;  %v574_v8 = vld [vmem:[#allocation7 + $0x10] sm:$0xff]   ;;  %s430_s29 = sshll.u32 %s714_s28, 4  ;;  %s431_s29 = int_to_ptr.vmem [resolvable:$true] %s430_s29 }
  0x4c   :  { %496 = vmatpush3.bf16.msra.mxu0 %v564_v1  ;;  %516 = vmatpush3.bf16.msra.mxu1 %v572_v4  ;;  %v569_v9 = vld [vmem:[#allocation5 + $0x28] sm:$0xff]   ;;  %v575_v10 = vld [vmem:[#allocation7 + $0x18] sm:$0xff]   ;;  %v570_v11 = vld [vmem:[#allocation5 + $0x30] sm:$0xff]   ;;  %p681_p5 = scmp.lt.s32.totalorder %s431_s29, %s431_s29 }
  0x4d   :  { %497 = vmatprep.subr.bf16.mxu0 %v712_v0  ;;  %517 = vmatprep.subr.bf16.mxu1 %v712_v0  ;;  %v576_v12 = vld [vmem:[#allocation7 + $0x20] sm:$0xff]   ;;  %v571_v13 = vld [vmem:[#allocation5 + $0x38] sm:$0xff]   ;;  %v577_v14 = vld [vmem:[#allocation7 + $0x28] sm:$0xff]  }
  0x4e   :  { %v81_v15 = vld [vmem:[#allocation2] sm:$0xf]  ;;  %v578_v16 = vld [vmem:[#allocation7 + $0x30] sm:$0xff]   ;;  %v580_v18 = vld [vmem:[#allocation8] sm:$0xff]  }
  0x4f   :  { %v579_v17 = vld [vmem:[#allocation7 + $0x38] sm:$0xff]   ;;  %v581_v19 = vld [vmem:[#allocation8 + $0x8] sm:$0xff]   ;;  %v582_v20 = vld [vmem:[#allocation8 + $0x10] sm:$0xff]  }
  0x50   :  { %498 = vmatpush3.bf16.msra.mxu0 %v565_v2  ;;  %518 = vmatpush3.bf16.msra.mxu1 %v573_v6  ;;  %v583_v21 = vld [vmem:[#allocation8 + $0x18] sm:$0xff]   ;;  %v584_v22 = vld [vmem:[#allocation8 + $0x20] sm:$0xff]   ;;  %v585_v23 = vld [vmem:[#allocation8 + $0x28] sm:$0xff]  }
  0x51   :  { %499 = vmatprep.subr.bf16.mxu0 %v712_v0  ;;  %519 = vmatprep.subr.bf16.mxu1 %v712_v0  ;;  %v441_v24 = vld [vmem:[%s865_s2] ss:$0 sm:$0xff]  ;;  %v586_v33 = vld [vmem:[#allocation8 + $0x30] sm:$0xff]  }
  0x52   :  { %v587_v34 = vld [vmem:[#allocation8 + $0x38] sm:$0xff]  }
  0x53   :  { %v450_v35 = vld [vmem:[%s867_s4] ss:$0 sm:$0xff]  ;;  %s676_s4 = scalar_lea.vmem %s431_s29, 128 }
  0x54   :  { %500 = vmatpush3.bf16.msra.mxu0 %v566_v3  ;;  %520 = vmatpush3.bf16.msra.mxu1 %v574_v8  ;;  %v459_v44 = vld [vmem:[%s869_s6] ss:$0 sm:$0xff]  ;;  %p677_p4 = scmp.ne.s32.totalorder %s431_s29, %s676_s4  ;;  %p682_p6 = scmp.lt.s32.totalorder %s676_s4, %s676_s4 }
  0x55   :  { %501 = vmatprep.subr.bf16.mxu0 %v712_v0  ;;  %521 = vmatprep.subr.bf16.mxu1 %v712_v0 }
  0x56   :  { %p683_p7 = por %p682_p6, %p681_p5 }
  0x58   :  { %502 = vmatpush3.bf16.msra.mxu0 %v567_v5  ;;  %522 = vmatpush3.bf16.msra.mxu1 %v575_v10  ;;  %p684_p8 = pnand %p683_p7, %p677_p4 }
  0x59   :  { %503 = vmatprep.subr.bf16.mxu0 %v712_v0  ;;  %523 = vmatprep.subr.bf16.mxu1 %v712_v0 }
  0x5c   :  { %504 = vmatpush3.bf16.msra.mxu0 %v568_v7  ;;  %524 = vmatpush3.bf16.msra.mxu1 %v576_v12 }
  0x5d   :  { %505 = vmatprep.subr.bf16.mxu0 %v712_v0  ;;  %525 = vmatprep.subr.bf16.mxu1 %v712_v0 }
  0x60   :  { %506 = vmatpush3.bf16.msra.mxu0 %v569_v9  ;;  %526 = vmatpush3.bf16.msra.mxu1 %v577_v14 }
  0x61   :  { %507 = vmatprep.subr.bf16.mxu0 %v712_v0  ;;  %527 = vmatprep.subr.bf16.mxu1 %v712_v0 }
  0x64   :  { %508 = vmatpush3.bf16.msra.mxu0 %v570_v11  ;;  %528 = vmatpush3.bf16.msra.mxu1 %v578_v16 }
  0x65   :  { %509 = vmatprep.subr.bf16.mxu0 %v712_v0  ;;  %529 = vmatprep.subr.bf16.mxu1 %v712_v0 }
  0x68   :  { %510 = vmatpush3.bf16.msra.mxu0 %v571_v13  ;;  %530 = vmatpush3.bf16.msra.mxu1 %v579_v17 }
  0x69   :  { %535 = vmatprep.subr.bf16.mxu0 %v712_v0 }
  0x6b   :  { %512 = vmatmul.mubr.bf16.vlgmr.msra.gmra.mrb[0].mxu0 %v81_v15 }
  0x6c   :  { %551 = vmatprep.mubr.msk.bf16.mxu0 %vm713_vm0, %v712_v0  ;;  %536 = vmatpush3.bf16.msra.mxu0 %v580_v18 }
  0x6d   :  { %537 = vmatprep.subr.bf16.mxu0 %v712_v0 }
  0x70   :  { %538 = vmatpush3.bf16.msra.mxu0 %v581_v19 }
  0x71   :  { %539 = vmatprep.subr.bf16.mxu0 %v712_v0 }
  0x74   :  { %540 = vmatpush3.bf16.msra.mxu0 %v582_v20 }
  0x75   :  { %541 = vmatprep.subr.bf16.mxu0 %v712_v0 }
  0x78   :  { %542 = vmatpush3.bf16.msra.mxu0 %v583_v21 }
  0x79   :  { %543 = vmatprep.subr.bf16.mxu0 %v712_v0 }
  0x7c   :  { %544 = vmatpush3.bf16.msra.mxu0 %v584_v22 }
  0x7d   :  { %545 = vmatprep.subr.bf16.mxu0 %v712_v0 }
  0x80   :  { %546 = vmatpush3.bf16.msra.mxu0 %v585_v23 }
  0x81   :  { %547 = vmatprep.subr.bf16.mxu0 %v712_v0 }
  0x84   :  { %548 = vmatpush3.bf16.msra.mxu0 %v586_v33 }
  0x85   :  { %549 = vmatprep.subr.bf16.mxu0 %v712_v0 }
  0x88   :  { %550 = vmatpush3.bf16.msra.mxu0 %v587_v34 }
 0x13e   :  { %v187_v25 = vpop.f32.mrb[0].mxu0 }
 0x13f   :  { %v188_v26 = vadd.f32 %v441_v24, %v187_v25  ;;  %v513_v27 = vpop.f32.mrb[1].mxu0 }
 0x140   :  { %v190_v28 = vpop.f32.mrb[2].mxu0 }
 0x141   :  { %vm193_vm1 = vcmp.gt.f32.partialorder %v188_v26, 0.0  ;;  %v194_v29 = vmul.f32 0.01, %v188_v26  ;;  %v514_v30 = vpop.f32.mrb[3].mxu0 }
 0x143   :  { %v195_v31 = vsel %vm193_vm1, %v188_v26, %v194_v29 }
 0x144   :  { %v196_v32 = vpack.c.bf16 %v195_v31, %v195_v31 }
 0x146   :  { %532 = vmatmul.mubr.bf16.vlgmr.msra.gmra.mrb[0].mxu1 %v196_v32 }
 0x219   :  { %v302_v36 = vpop.f32.mrb[0].mxu1 }
 0x21a   :  { %v303_v37 = vadd.f32 %v450_v35, %v302_v36  ;;  %v533_v38 = vpop.f32.mrb[1].mxu1 }
 0x21b   :  { %v305_v39 = vpop.f32.mrb[2].mxu1 }
 0x21c   :  { %vm308_vm2 = vcmp.gt.f32.partialorder %v303_v37, 0.0  ;;  %v309_v40 = vmul.f32 0.01, %v303_v37  ;;  %v534_v41 = vpop.f32.mrb[3].mxu1 }
 0x21e   :  { %v310_v42 = vsel %vm308_vm2, %v303_v37, %v309_v40 }
 0x21f   :  { %v311_v43 = vpack.c.bf16 %v310_v42, %v310_v42 }
 0x221   :  { %552 = vmatmul.mubr.bf16.vlgmr.msra.gmra.mrb[4].mxu0 %v311_v43 }
 0x2f4   :  { %v417_v45 = vpop.f32.mrb[4].mxu0 }
 0x2f5   :  { %v418_v46 = vadd.f32 %v459_v44, %v417_v45  ;;  %v553_v47 = vpop.f32.mrb[5].mxu0 }
 0x2f6   :  { %v420_v48 = vpop.f32.mrb[6].mxu0 }
 0x2f7   :  { %423 = vst [vmem:[#allocation10] sm:$0xff] %v418_v46  ;;  %v554_v49 = vpop.f32.mrb[7].mxu0 }
 0x2f8   :  { %687 = shalt.err (!%p684_p8)
}
 0x2f9   :  { %s688_s6 = scalar_lea.hbm %s870_s7, 128 }
 0x2fa   :  { %p689_p9 = scmp.ne.s32.totalorder %s870_s7, %s688_s6  ;;  %p692_p10 = scmp.lt.u32.totalorder %s688_s6, %s870_s7 }
 0x2fc   :  { %p694_p11 = pnand %p692_p10, %p689_p9 }
 0x2fe   :  { %697 = shalt.err (!%p694_p11)
}
 0x2ff   :  { %433 = dma.vmem_to_hbm [thread:$0]  %s431_s29, 128, %s870_s7, [#allocation4]  }
 0x300   :  { %704 = dma.done.wait [#allocation4], 128  }
 0x301   :  { %705 = vsyncadd [#allocation4], 4294967168 }
 0x302   :  { %437 = vsyncpa [#allocation3], 1 }
 0x303   :  { %438 = vsyncpa [#allocation6], 1 }
 0x304   :  { %439 = vsyncpa [#allocation9], 1 }
 0x305   :  { %440 = vsyncpa [#allocation4], 1 }

</bundles_post_ra>
